<compile_context>
chip_gen: v7x
topology: tpu7x:2x2x1
jax: 0.10.0
libtpu: 0.0.40
codegen_flags: <defaults>
</compile_context>

<pallas_src>
import functools

import jax
import jax.numpy as jnp
from jax import lax
from jax.experimental import pallas as pl
from jax.experimental.pallas import tpu as pltpu


def _round_up(v, m):
    return (v + m - 1) // m * m


# Multiples of 256 keep every MXU push fully populated on the 256x256 MXUs
# (v6e/v7x); 128 is the universal fallback (hp is always a multiple of 128).
_TN_CANDIDATES = (1024, 512, 256, 128)


def _pick_tn(hp, cap):
    for c in _TN_CANDIDATES:
        if c <= cap and hp % c == 0:
            return c
    return 128


def _chip_vmem_bytes():
    try:
        return int(pltpu.get_tpu_info().vmem_capacity_bytes)
    except Exception:
        return 64 << 20          # conservative (v7x-sized) fallback


def _resblock_kernel(x_ref, w_ref, b_ref, o_ref, *, tn):
    """o = x + silu(x @ W^T + b) for one (tm, tn) output tile.

    x_ref: (tm, H)  activation tile, resident across the N grid axis.
    w_ref: (tn, H)  weight row panel, PyTorch [out, in] layout (streamed).
    b_ref: (1, H)   full bias row, resident.
    """
    # x @ W^T: contract the last dim of both operands -> MXU, f32 accumulation.
    z = lax.dot_general(
        x_ref[...], w_ref[...],
        dimension_numbers=(((1,), (1,)), ((), ())),
        preferred_element_type=jnp.float32)

    off = pl.multiple_of(pl.program_id(1) * tn, 128)       # lane-aligned slice
    z = z + b_ref[:, pl.ds(off, tn)].astype(jnp.float32)   # [tm,tn] + [1,tn]
    silu = z * jax.nn.sigmoid(z)                            # EUP sigmoid, VPU mul
    xres = x_ref[:, pl.ds(off, tn)].astype(jnp.float32)     # residual from resident tile
    o_ref[...] = (xres + silu).astype(o_ref.dtype)


def resblock_forward(x, weight, bias, *, tm=None, tn=None, interpret=False):
    """
    y = x + SiLU(x @ weight.T + bias)

    x:      [..., hidden]
    weight: [hidden_out, hidden_in]   (PyTorch nn.Linear layout, consumed as-is)
    bias:   [hidden]
    """
    orig_shape = x.shape
    hidden = orig_shape[-1]
    x2d = x.reshape(-1, hidden)
    m = x2d.shape[0]

    hp = _round_up(hidden, 128)          # lane-dense K / output dimension

    x_item = jnp.dtype(x.dtype).itemsize
    w_item = jnp.dtype(weight.dtype).itemsize
    b_item = jnp.dtype(bias.dtype).itemsize

    # Chip-aware VMEM budget.
    vmem_cap = _chip_vmem_bytes()
    if vmem_cap >= (128 << 20):          # v5e / v6e: 128 MiB physical VMEM
        budget, limit_cap, tn_cap = 100 << 20, 112 << 20, 1024
    else:                                # v7x: 64 MiB per TC
        budget, limit_cap, tn_cap = 48 << 20, 56 << 20, 512

    # dtype-aware sublane packing for tm (f32: 8, bf16: 16, int8/fp8: 32).
    sub = max(8, 32 // x_item)
    if tm is None:
        tm = min(512, _round_up(m, sub))
    tm = max(sub, _round_up(tm, sub))
    if tn is None:
        tn = _pick_tn(hp, tn_cap)

    def _footprint(tm_, tn_):
        return (2 * tm_ * hp * x_item        # x tile (double-buffered)
                + 2 * tn_ * hp * w_item      # weight row panel (weight itemsize)
                + 2 * hp * b_item            # bias row (tiny, resident)
                + 2 * tm_ * tn_ * x_item     # output tile
                + 2 * tm_ * tn_ * 4)         # f32 epilogue staging (z / silu)

    # Shrink tn before tm: smaller tn only adds grid steps (x stays resident),
    # smaller tm re-streams the whole weight more often at prefill.
    while _footprint(tm, tn) > budget:
        if tn > 128:
            tn = _pick_tn(hp, tn // 2)
        elif tm > sub:
            tm = max(sub, tm // 2)
        else:
            break
    # TODO(synk): add a K grid axis + f32 accumulator scratch (pl.when
    # init/finalize) for hidden sizes where the full-K (tm, H) x tile no longer
    # fits (triggers first on v7x's 64 MiB VMEM).

    # Explicit zero padding only for the lane/K dimension (required so the
    # contraction doesn't read garbage); the M axis relies on pl.cdiv
    # edge-block handling, so no pad copy of x at all when hidden % 128 == 0.
    if hp != hidden:
        xp = jnp.zeros((m, hp), x.dtype).at[:, :hidden].set(x2d)
        wp = jnp.zeros((hp, hp), weight.dtype).at[:hidden, :hidden].set(weight)
        bp = jnp.zeros((1, hp), bias.dtype).at[:, :hidden].set(bias.reshape(1, hidden))
    else:
        xp, wp, bp = x2d, weight, bias.reshape(1, hidden)

    grid = (pl.cdiv(m, tm), hp // tn)
    vmem_limit = int(min(limit_cap, max(32 << 20, _footprint(tm, tn) * 5 // 4)))

    out = pl.pallas_call(
        functools.partial(_resblock_kernel, tn=tn),
        out_shape=jax.ShapeDtypeStruct((m, hp), x.dtype),
        grid_spec=pltpu.PrefetchScalarGridSpec(
            num_scalar_prefetch=0,
            grid=grid,
            in_specs=[
                pl.BlockSpec((tm, hp), lambda i, j: (i, 0)),   # x tile, resident across j
                pl.BlockSpec((tn, hp), lambda i, j: (j, 0)),   # W row panel ([out,in] layout)
                pl.BlockSpec((1, hp), lambda i, j: (0, 0)),    # bias (resident)
            ],
            out_specs=pl.BlockSpec((tm, tn), lambda i, j: (i, j)),
        ),
        compiler_params=pltpu.CompilerParams(
            dimension_semantics=("parallel", "parallel"),
            vmem_limit_bytes=vmem_limit,
        ),
        interpret=interpret,
    )(xp, wp, bp)

    if hp != hidden:
        out = out[:, :hidden]
    return out.reshape(orig_shape)


def _reference(x, weight, bias):
    z = jnp.einsum("...i,oi->...o", x.astype(jnp.float32), weight.astype(jnp.float32))
    z = z + bias.astype(jnp.float32)
    return (x.astype(jnp.float32) + z * jax.nn.sigmoid(z)).astype(x.dtype)


if __name__ == "__main__":
    key = jax.random.PRNGKey(0)
    k1, k2, k3, k4 = jax.random.split(key, 4)

    # --- Test 1: spec-faithful init (zero weight, uniform bias), hidden=32 ---
    batch, seq, hidden = 2, 8, 32
    x = jax.random.normal(k1, (batch, seq, hidden), dtype=jnp.float32)
    weight0 = jnp.zeros((hidden, hidden), dtype=jnp.float32)
    bound = 1.0 / float(hidden) ** 0.5
    bias0 = jax.random.uniform(k2, (hidden,), minval=-bound, maxval=bound,
                               dtype=jnp.float32)

    y = jax.block_until_ready(resblock_forward(x, weight0, bias0))
    y_ref = _reference(x, weight0, bias0)
    assert y.shape == x.shape
    assert jnp.allclose(y, y_ref, atol=1e-5, rtol=1e-5), "zero-weight mismatch"

    # --- Test 2: non-zero weight, lane-aligned hidden=128 (no-pad MXU path) ---
    batch2, seq2, hidden2 = 2, 8, 128
    x2 = jax.random.normal(k3, (batch2, seq2, hidden2), dtype=jnp.float32)
    w2 = 0.05 * jax.random.normal(k4, (hidden2, hidden2), dtype=jnp.float32)
    b2 = 0.1 * jax.random.normal(k2, (hidden2,), dtype=jnp.float32)

    y2 = jax.block_until_ready(resblock_forward(x2, w2, b2))
    y2_ref = _reference(x2, w2, b2)
    assert jnp.allclose(y2, y2_ref, atol=2e-2, rtol=2e-2), "nonzero-weight mismatch"

    # --- Test 3: bf16 operands (MXU-native fast path) with lane padding ---
    x3 = x.astype(jnp.bfloat16)
    w3 = (0.05 * jax.random.normal(k4, (hidden, hidden), dtype=jnp.float32)
          ).astype(jnp.bfloat16)
    b3 = bias0.astype(jnp.bfloat16)
    y3 = jax.block_until_ready(resblock_forward(x3, w3, b3))
    y3_ref = _reference(x3, w3, b3)
    assert jnp.allclose(y3.astype(jnp.float32), y3_ref.astype(jnp.float32),
                        atol=3e-2, rtol=3e-2), "bf16 mismatch"

    # --- Test 4: M not a multiple of the tile (exercises edge-block path) ---
    x4 = jax.random.normal(k1, (3, 5, 128), dtype=jnp.float32)   # m = 15
    y4 = jax.block_until_ready(resblock_forward(x4, w2, b2))
    y4_ref = _reference(x4, w2, b2)
    assert jnp.allclose(y4, y4_ref, atol=2e-2, rtol=2e-2), "edge-block mismatch"

    print("KERNEL_OK")
</pallas_src>

<mosaic_0001>
module attributes {stable_mosaic.version = 11 : i64} {
  func.func @_resblock_kernel(%arg0: i32, %arg1: i32, %arg2: memref<16x128xf32, #tpu.memory_space<vmem>>, %arg3: memref<128x128xf32, #tpu.memory_space<vmem>>, %arg4: memref<1x128xf32, #tpu.memory_space<vmem>>, %arg5: memref<16x128xf32, #tpu.memory_space<vmem>>) attributes {dimension_semantics = [#tpu.dimension_semantics<parallel>, #tpu.dimension_semantics<parallel>], iteration_bounds = array<i64: 1, 1>, scalar_prefetch = 0 : i64, scratch_operands = 0 : i64, tpu.core_type = #tpu.core_type<tc>, window_params = [{transform_indices = @transform_0, window_bounds = array<i64: 16, 128>}, {transform_indices = @transform_1, window_bounds = array<i64: 128, 128>}, {pipeline_mode = #tpu.pipeline_mode<synchronous>, transform_indices = @transform_2, window_bounds = array<i64: 1, 128>}, {transform_indices = @transform_3, window_bounds = array<i64: 16, 128>}]} {
    %c0 = arith.constant 0 : index
    %c0_0 = arith.constant 0 : index
    %0 = vector.load %arg2[%c0, %c0_0] : memref<16x128xf32, #tpu.memory_space<vmem>>, vector<16x128xf32>
    %c0_1 = arith.constant 0 : index
    %c0_2 = arith.constant 0 : index
    %1 = vector.load %arg3[%c0_1, %c0_2] : memref<128x128xf32, #tpu.memory_space<vmem>>, vector<128x128xf32>
    %cst = arith.constant dense<0.000000e+00> : vector<16x128xf32>
    %2 = tpu.matmul %0, %1, %cst {dimension_numbers = #tpu.dot_dimension_numbers<[1], [1], [0], [0], [0, 0, 1, 0], [], []>} : vector<16x128xf32>, vector<128x128xf32>, vector<16x128xf32> -> vector<16x128xf32>
    %c128_i32 = arith.constant 128 : i32
    %3 = arith.muli %arg1, %c128_i32 : i32
    %4 = tpu.assume_multiple %3, 128 : i32
    %c0_3 = arith.constant 0 : index
    %5 = arith.index_cast %4 : i32 to index
    %6 = vector.load %arg4[%c0_3, %5] : memref<1x128xf32, #tpu.memory_space<vmem>>, vector<1x128xf32>
    %7 = vector.broadcast %6 : vector<1x128xf32> to vector<16x128xf32>
    %8 = arith.addf %2, %7 : vector<16x128xf32>
    %9 = arith.negf %8 : vector<16x128xf32>
    %10 = math.exp %9 : vector<16x128xf32>
    %cst_4 = arith.constant 1.000000e+00 : f32
    %11 = vector.broadcast %cst_4 : f32 to vector<16x128xf32>
    %12 = arith.addf %11, %10 : vector<16x128xf32>
    %13 = arith.divf %11, %12 : vector<16x128xf32>
    %14 = arith.mulf %8, %13 : vector<16x128xf32>
    %c0_5 = arith.constant 0 : index
    %15 = arith.index_cast %4 : i32 to index
    %16 = vector.load %arg2[%c0_5, %15] : memref<16x128xf32, #tpu.memory_space<vmem>>, vector<16x128xf32>
    %17 = arith.addf %16, %14 : vector<16x128xf32>
    %c0_6 = arith.constant 0 : index
    %c0_7 = arith.constant 0 : index
    %18 = vector.load %arg5[%c0_6, %c0_7] : memref<16x128xf32, #tpu.memory_space<vmem>>, vector<16x128xf32>
    tpu.vector_store %arg5[%c0_6, %c0_7], %17 {strides = array<i32>} : memref<16x128xf32, #tpu.memory_space<vmem>>, vector<16x128xf32>,
    return
  }
  func.func @transform_0(%arg0: i32, %arg1: i32) -> (i32, i32) {
    %c0_i32 = arith.constant 0 : i32
    %c0_i32_0 = arith.constant 0 : i32
    return %arg0, %c0_i32 : i32, i32
  }
  func.func @transform_1(%arg0: i32, %arg1: i32) -> (i32, i32) {
    %c0_i32 = arith.constant 0 : i32
    %c0_i32_0 = arith.constant 0 : i32
    return %arg1, %c0_i32 : i32, i32
  }
  func.func @transform_2(%arg0: i32, %arg1: i32) -> (i32, i32) {
    %c0_i32 = arith.constant 0 : i32
    %c0_i32_0 = arith.constant 0 : i32
    %c0_i32_1 = arith.constant 0 : i32
    return %c0_i32, %c0_i32_0 : i32, i32
  }
  func.func @transform_3(%arg0: i32, %arg1: i32) -> (i32, i32) {
    %c0_i32 = arith.constant 0 : i32
    return %arg0, %arg1 : i32, i32
  }
}

</mosaic_0001>

<bundles_post_ra>
// kernel: tpu_custom_call.1
= control target key start
LH: loop header
LB: loop body
LE: loop exit
PB: predicated region body
PF: predicated region fallthrough
CT: control target
= control target key end

     0   :  { %8 = vsyncpa [#allocation3], 0  ;;  %s434_s0 = inlined_call_operand.hbm [shape: f32[16,128], index: 0, kind: input, shape index: {}]   ;;  %s435_s1 = inlined_call_operand.hbm [shape: f32[128,128], index: 1, kind: input, shape index: {}]   ;;  %s436_s2 = inlined_call_operand.vmem [shape: f32[1,128], index: 2, kind: input, shape index: {}]   ;;  %s437_s3 = inlined_call_operand.hbm [shape: f32[16,128], index: 3, kind: output, shape index: {}]  }
   0x1   :  { %9 = vsyncpa [#allocation6], 0 }
   0x2   :  { %10 = vsyncpa [#allocation4], 0  ;;  %s361_s12 = smov [#allocation2]   ;;  %s289_s16 = scalar_lea.hbm %s434_s0, 256 }
   0x3   :  { %s16_s13 = sshll.u32 %s361_s12, 4  ;;  %p290_p0 = scmp.ne.s32.totalorder %s434_s0, %s289_s16  ;;  %s17_s13 = int_to_ptr.vmem [resolvable:$true] %s16_s13 }
   0x4   :  { %p293_p1 = scmp.lt.u32.totalorder %s289_s16, %s434_s0 }
   0x6   :  { %p295_p2 = pnand %p293_p1, %p290_p0 }
   0x8   :  { %298 = shalt.err (!%p295_p2)
}
   0x9   :  { %s299_s21 = scalar_lea.vmem %s17_s13, 256  ;;  %p304_p4 = scmp.lt.s32.totalorder %s17_s13, %s17_s13 }
   0xa   :  { %p300_p3 = scmp.ne.s32.totalorder %s17_s13, %s299_s21  ;;  %p305_p5 = scmp.lt.s32.totalorder %s299_s21, %s299_s21 }
   0xc   :  { %p306_p6 = por %p305_p5, %p304_p4 }
   0xe   :  { %p307_p7 = pnand %p306_p6, %p300_p3 }
  0x10   :  { %310 = shalt.err (!%p307_p7)
}
  0x11   :  { %s362_s22 = smov 128   ;;  %s363_s23 = smov 8  }
  0x12   :  { %22 = dma.hbm_to_vmem [thread:$0]  %s434_s0, 256, %s17_s13, [#allocation3], %s362_s22, %s362_s22, %s363_s23  }
  0x13   :  { %s364_s26 = smov [#allocation5]   ;;  %s311_s30 = scalar_lea.hbm %s435_s1, 2048 }
  0x14   :  { %s28_s27 = sshll.u32 %s364_s26, 4  ;;  %p312_p8 = scmp.ne.s32.totalorder %s435_s1, %s311_s30  ;;  %s29_s27 = int_to_ptr.vmem [resolvable:$true] %s28_s27 }
  0x15   :  { %p315_p9 = scmp.lt.u32.totalorder %s311_s30, %s435_s1 }
  0x17   :  { %p317_p10 = pnand %p315_p9, %p312_p8 }
  0x19   :  { %320 = shalt.err (!%p317_p10)
}
  0x1a   :  { %s321_s8 = scalar_lea.vmem %s29_s27, 2048  ;;  %p326_p12 = scmp.lt.s32.totalorder %s29_s27, %s29_s27 }
  0x1b   :  { %p322_p11 = scmp.ne.s32.totalorder %s29_s27, %s321_s8  ;;  %p327_p13 = scmp.lt.s32.totalorder %s321_s8, %s321_s8 }
  0x1d   :  { %p328_p0 = por %p327_p13, %p326_p12 }
  0x1f   :  { %p329_p1 = pnand %p328_p0, %p322_p11 }
  0x21   :  { %332 = shalt.err (!%p329_p1)
}
  0x22   :  { %34 = dma.hbm_to_vmem [thread:$0]  %s435_s1, 2048, %s29_s27, [#allocation6], %s362_s22, %s362_s22, %s363_s23  }
  0x23   :  { %355 = dma.done.wait [#allocation3], 256  }
  0x24   :  { %356 = vsyncadd [#allocation3], 4294967040 }
  0x25   :  { %357 = dma.done.wait [#allocation6], 2048  }
  0x26   :  { %358 = vsyncadd [#allocation6], 4294965248  ;;  %v45_v0 = vld [vmem:[#allocation5] sm:$0xff]  ;;  %v46_v1 = vld [vmem:[#allocation5 + $0x8] sm:$0xff]  ;;  %s365_s11 = smov [#allocation7]  }
  0x27   :  { %v47_v2 = vld [vmem:[#allocation5 + $0x10] sm:$0xff]  ;;  %v244_v3 = vpack.c.bf16 %v46_v1, %v45_v0  ;;  %v48_v4 = vld [vmem:[#allocation5 + $0x18] sm:$0xff]  ;;  %v49_v7 = vld [vmem:[#allocation5 + $0x20] sm:$0xff]  ;;  %s173_s12 = sshll.u32 %s365_s11, 4  ;;  %s174_s12 = int_to_ptr.vmem [resolvable:$true] %s173_s12 }
  0x28   :  { %v248_v5 = vpack.c.bf16 %v48_v4, %v47_v2  ;;  %v43_v6 = vld [vmem:[#allocation2] sm:$0xff]  ;;  %v50_v8 = vld [vmem:[#allocation5 + $0x28] sm:$0xff]  ;;  %v52_v11 = vld [vmem:[#allocation5 + $0x38] sm:$0xff]  ;;  %p338_p3 = scmp.lt.s32.totalorder %s174_s12, %s174_s12 }
  0x29   :  { %245 = vmatprep.subr.bf16.mxu0 %v244_v3  ;;  %241 = vmatprep.mubr.f32.mxu0 %v43_v6  ;;  %v252_v9 = vpack.c.bf16 %v50_v8, %v49_v7  ;;  %v51_v10 = vld [vmem:[#allocation5 + $0x30] sm:$0xff]  ;;  %v53_v13 = vld [vmem:[#allocation5 + $0x40] sm:$0xff]  ;;  %v54_v14 = vld [vmem:[#allocation5 + $0x48] sm:$0xff] }
  0x2a   :  { %247 = vmatpush3.bf16.xpose.msra.mxu0 %v244_v3  ;;  %v256_v12 = vpack.c.bf16 %v52_v11, %v51_v10  ;;  %v260_v15 = vpack.c.bf16 %v54_v14, %v53_v13  ;;  %v55_v16 = vld [vmem:[#allocation5 + $0x50] sm:$0xff]  ;;  %v56_v17 = vld [vmem:[#allocation5 + $0x58] sm:$0xff]  ;;  %v57_v19 = vld [vmem:[#allocation5 + $0x60] sm:$0xff] }
  0x2b   :  { %249 = vmatprep.subr.bf16.mxu0 %v248_v5  ;;  %v264_v18 = vpack.c.bf16 %v56_v17, %v55_v16  ;;  %v58_v20 = vld [vmem:[#allocation5 + $0x68] sm:$0xff]  ;;  %v59_v22 = vld [vmem:[#allocation5 + $0x70] sm:$0xff]  ;;  %v60_v23 = vld [vmem:[#allocation5 + $0x78] sm:$0xff] }
  0x2c   :  { %v268_v21 = vpack.c.bf16 %v58_v20, %v57_v19  ;;  %v272_v24 = vpack.c.bf16 %v60_v23, %v59_v22  ;;  %v44_v25 = vld [vmem:[#allocation2 + $0x8] sm:$0xff]  ;;  %v188_v26 = vld [vmem:[%s436_s2] ss:$0 sm:$0xff]  ;;  %s333_s2 = scalar_lea.vmem %s174_s12, 256 }
  0x2d   :  { %p334_p2 = scmp.ne.s32.totalorder %s174_s12, %s333_s2  ;;  %p339_p4 = scmp.lt.s32.totalorder %s333_s2, %s333_s2 }
  0x2f   :  { %p340_p5 = por %p339_p4, %p338_p3 }
  0x31   :  { %p341_p6 = pnand %p340_p5, %p334_p2 }
  0x32   :  { %251 = vmatpush3.bf16.xpose.msra.mxu0 %v248_v5 }
  0x33   :  { %253 = vmatprep.subr.bf16.mxu0 %v252_v9 }
  0x3a   :  { %255 = vmatpush3.bf16.xpose.msra.mxu0 %v252_v9 }
  0x3b   :  { %257 = vmatprep.subr.bf16.mxu0 %v256_v12 }
  0x42   :  { %259 = vmatpush3.bf16.xpose.msra.mxu0 %v256_v12 }
  0x43   :  { %261 = vmatprep.subr.bf16.mxu0 %v260_v15 }
  0x4a   :  { %263 = vmatpush3.bf16.xpose.msra.mxu0 %v260_v15 }
  0x4b   :  { %265 = vmatprep.subr.bf16.mxu0 %v264_v18 }
  0x52   :  { %267 = vmatpush3.bf16.xpose.msra.mxu0 %v264_v18 }
  0x53   :  { %269 = vmatprep.subr.bf16.mxu0 %v268_v21 }
  0x5a   :  { %271 = vmatpush3.bf16.xpose.msra.mxu0 %v268_v21 }
  0x5b   :  { %273 = vmatprep.subr.bf16.mxu0 %v272_v24 }
  0x62   :  { %275 = vmatpush3.bf16.xpose.msra.mxu0 %v272_v24 }
  0x69   :  { %242 = vmatmul.mubr.f32.vlgmr.msra.gmra.mrb[0].mxu0 %v44_v25 }
 0x13c   :  { %v243_v27 = vpop.f32.mrb[0].mxu0 }
 0x13d   :  { %v144_v28 = vadd.f32 %v243_v27, %v188_v26  ;;  %v138_v29 = vpop.f32.mrb[1].mxu0 }
 0x13e   :  { %v139_v30 = vadd.f32 %v188_v26, %v138_v29 }
 0x13f   :  { %v190_v31 = vmul.f32 -1.442695, %v144_v28 }
 0x140   :  { %v189_v32 = vmul.f32 -1.442695, %v139_v30 }
 0x141   :  { %281 = vpow2.f32 %v190_v31 }
 0x142   :  { %283 = vpow2.f32 %v189_v32 }
 0x14b   :  { %v282_v33 = vpop.eup %281 }
 0x14c   :  { %v284_v34 = vpop.eup %283  ;;  %v154_v35 = vadd.f32 1.0, %v282_v33 }
 0x14d   :  { %v153_v36 = vadd.f32 1.0, %v284_v34 }
 0x14e   :  { %285 = vrcp.f32 %v154_v35 }
 0x14f   :  { %287 = vrcp.f32 %v153_v36 }
 0x158   :  { %v286_v37 = vpop.eup %285 }
 0x159   :  { %v288_v38 = vpop.eup %287  ;;  %v160_v39 = vmul.f32 %v286_v37, %v144_v28 }
 0x15a   :  { %v159_v40 = vmul.f32 %v288_v38, %v139_v30 }
 0x15b   :  { %v165_v41 = vadd.f32 %v160_v39, %v44_v25 }
 0x15c   :  { %v164_v42 = vadd.f32 %v159_v40, %v43_v6 }
 0x15d   :  { %167 = vst [vmem:[#allocation7 + $0x8] sm:$0xff] %v165_v41 }
 0x15e   :  { %166 = vst [vmem:[#allocation7] sm:$0xff] %v164_v42 }
 0x15f   :  { %344 = shalt.err (!%p341_p6)
}
 0x160   :  { %s345_s15 = scalar_lea.hbm %s437_s3, 256 }
 0x161   :  { %p346_p7 = scmp.ne.s32.totalorder %s437_s3, %s345_s15  ;;  %p349_p8 = scmp.lt.u32.totalorder %s345_s15, %s437_s3 }
 0x163   :  { %p351_p9 = pnand %p349_p8, %p346_p7 }
 0x165   :  { %354 = shalt.err (!%p351_p9)
}
 0x166   :  { %179 = dma.vmem_to_hbm [thread:$0]  %s174_s12, 256, %s437_s3, [#allocation4], %s362_s22, %s362_s22, %s363_s23  }
 0x167   :  { %359 = dma.done.wait [#allocation4], 256  }
 0x168   :  { %360 = vsyncadd [#allocation4], 4294967040 }
 0x169   :  { %183 = vsyncpa [#allocation3], 1 }
 0x16a   :  { %184 = vsyncpa [#allocation6], 1 }
 0x16b   :  { %185 = vsyncpa [#allocation4], 1 }

</bundles_post_ra>
